<compile_context>
chip_gen: v7x
topology: tpu7x:2x2x1
jax: 0.10.0
libtpu: 0.0.40
codegen_flags: <defaults>
</compile_context>

<pallas_src>
import jax
import jax.numpy as jnp
from jax.experimental import pallas as pl
from jax.experimental.pallas import tpu as pltpu


def _maxloss_partial_kernel(x_ref, o_ref):
    # x_ref: (C, TILE) block (native dtype); o_ref: (1, 128) f32 lane partial.
    x = x_ref[...].astype(jnp.float32)
    m = jnp.max(x, axis=0, keepdims=True)                    # (1, TILE) channel max
    denom = jnp.sum(jnp.exp(x - m), axis=0, keepdims=True)   # (1, TILE) softmax denom
    # max over channels of softmax == 1 / denom
    per_elem = 1.0 - 1.0 / denom                             # (1, TILE)

    # Fold TILE lanes down to one 128-lane partial sum via static, 128-aligned
    # slices + adds (VPU only; no per-tile cross-lane scalar reduce, no masked
    # narrow stores in the hot loop).
    tile = per_elem.shape[1]
    lane_partial = per_elem[:, 0:128]
    for k in range(1, tile // 128):
        lane_partial = lane_partial + per_elem[:, k * 128:(k + 1) * 128]
    o_ref[...] = lane_partial


def _pick_tile(hw_padded, c, cap=2048):
    # Largest multiple of 128 that divides hw_padded, bounded by `cap` and a
    # rough VMEM budget (~6 live (C, TILE) f32 copies kept under ~8 MiB so it
    # also fits v5e's 16 MiB / v7x's smaller scoped VMEM).
    budget_cols = max(128, (8 * 1024 * 1024) // (24 * max(c, 1)))
    cap = max(128, min(cap, (budget_cols // 128) * 128))
    tile = 128
    cand = 128
    while cand <= min(hw_padded, cap):
        if hw_padded % cand == 0:
            tile = cand
        cand += 128
    return tile


def max_loss(x):
    """x: [B, C, H, W] (NCHW, like the PyTorch module). Returns scalar f32."""
    B, C, H, W = x.shape
    HW = H * W
    x3 = x.reshape(B, C, HW)  # free reshape for NCHW layout (no HBM transpose)

    # Pad the lane axis to a multiple of 128 with zeros; every zero column
    # contributes exactly (1 - 1/C) to the sum and is subtracted afterwards.
    pad = (-HW) % 128
    if pad:
        x3 = jnp.pad(x3, ((0, 0), (0, 0), (0, pad)))
    HWp = HW + pad

    tile = _pick_tile(HWp, C)
    num_tiles = HWp // tile

    partials = pl.pallas_call(
        _maxloss_partial_kernel,
        out_shape=jax.ShapeDtypeStruct((B, num_tiles, 1, 128), jnp.float32),
        grid=(B, num_tiles),
        in_specs=[pl.BlockSpec((None, C, tile), lambda b, t: (b, 0, t))],
        out_specs=pl.BlockSpec((None, None, 1, 128),
                               lambda b, t: (b, t, 0, 0)),
        compiler_params=pltpu.CompilerParams(
            dimension_semantics=("parallel", "parallel")),
    )(x3)

    total = jnp.sum(partials)
    if pad:
        total = total - jnp.float32(B * pad) * (1.0 - 1.0 / jnp.float32(C))
    return total / jnp.float32(B * HW)


def max_loss_ref(x):
    # pure-JAX reference for correctness checking
    d = jax.nn.softmax(x.astype(jnp.float32), axis=1)
    return jnp.mean(1.0 - jnp.max(d, axis=1))


if __name__ == "__main__":
    key = jax.random.PRNGKey(0)

    # Main check: the module's implied NCHW shape.
    x = jax.random.normal(key, (2, 4, 16, 16), dtype=jnp.float32)
    got = jax.block_until_ready(max_loss(x))
    want = jax.block_until_ready(max_loss_ref(x))
    assert jnp.allclose(got, want, rtol=1e-5, atol=1e-6), (got, want)

    # Secondary check: odd spatial size exercises the lane-padding path.
    x2 = jax.random.normal(jax.random.PRNGKey(0), (2, 5, 15, 15),
                           dtype=jnp.float32)
    got2 = jax.block_until_ready(max_loss(x2))
    want2 = jax.block_until_ready(max_loss_ref(x2))
    assert jnp.allclose(got2, want2, rtol=1e-5, atol=1e-5), (got2, want2)

    print("KERNEL_OK")
</pallas_src>

<mosaic_0001>
module attributes {stable_mosaic.version = 11 : i64} {
  func.func @_maxloss_partial_kernel(%arg0: i32, %arg1: i32, %arg2: memref<1x4x256xf32, #tpu.memory_space<vmem>>, %arg3: memref<1x1x1x128xf32, #tpu.memory_space<vmem>>) attributes {dimension_semantics = [#tpu.dimension_semantics<parallel>, #tpu.dimension_semantics<parallel>], iteration_bounds = array<i64: 2, 1>, scalar_prefetch = 0 : i64, scratch_operands = 0 : i64, tpu.core_type = #tpu.core_type<tc>, window_params = [{transform_indices = @transform_0, window_bounds = array<i64: 1, 4, 256>}, {transform_indices = @transform_1, window_bounds = array<i64: 1, 1, 1, 128>}]} {
    %c0 = arith.constant 0 : index
    %c0_0 = arith.constant 0 : index
    %c0_1 = arith.constant 0 : index
    %0 = vector.load %arg2[%c0, %c0_0, %c0_1] : memref<1x4x256xf32, #tpu.memory_space<vmem>>, vector<1x4x256xf32>
    %1 = vector.shape_cast %0 : vector<1x4x256xf32> to vector<4x256xf32>
    %cst = arith.constant dense<0xFF800000> : vector<256xf32>
    %2 = vector.multi_reduction <maximumf>, %1, %cst [0] : vector<4x256xf32> to vector<256xf32>
    %3 = vector.shape_cast %2 : vector<256xf32> to vector<1x256xf32>
    %4 = vector.broadcast %3 : vector<1x256xf32> to vector<4x256xf32>
    %5 = arith.subf %1, %4 : vector<4x256xf32>
    %6 = math.exp %5 : vector<4x256xf32>
    %cst_2 = arith.constant dense<0.000000e+00> : vector<256xf32>
    %7 = vector.multi_reduction <add>, %6, %cst_2 [0] : vector<4x256xf32> to vector<256xf32>
    %8 = vector.shape_cast %7 : vector<256xf32> to vector<1x256xf32>
    %cst_3 = arith.constant 1.000000e+00 : f32
    %9 = vector.broadcast %cst_3 : f32 to vector<1x256xf32>
    %10 = arith.divf %9, %8 : vector<1x256xf32>
    %cst_4 = arith.constant 1.000000e+00 : f32
    %11 = vector.broadcast %cst_4 : f32 to vector<1x256xf32>
    %12 = arith.subf %11, %10 : vector<1x256xf32>
    %13 = vector.extract_strided_slice %12 {offsets = [0, 0], sizes = [1, 128], strides = [1, 1]} : vector<1x256xf32> to vector<1x128xf32>
    %14 = vector.extract_strided_slice %12 {offsets = [0, 128], sizes = [1, 128], strides = [1, 1]} : vector<1x256xf32> to vector<1x128xf32>
    %15 = arith.addf %13, %14 : vector<1x128xf32>
    %c0_5 = arith.constant 0 : index
    %c0_6 = arith.constant 0 : index
    %c0_7 = arith.constant 0 : index
    %c0_8 = arith.constant 0 : index
    %16 = vector.load %arg3[%c0_5, %c0_6, %c0_7, %c0_8] : memref<1x1x1x128xf32, #tpu.memory_space<vmem>>, vector<1x1x1x128xf32>
    %17 = vector.shape_cast %16 : vector<1x1x1x128xf32> to vector<1x128xf32>
    %18 = vector.shape_cast %15 : vector<1x128xf32> to vector<1x1x1x128xf32>
    tpu.vector_store %arg3[%c0_5, %c0_6, %c0_7, %c0_8], %18 {strides = array<i32>} : memref<1x1x1x128xf32, #tpu.memory_space<vmem>>, vector<1x1x1x128xf32>,
    return
  }
  func.func @transform_0(%arg0: i32, %arg1: i32) -> (i32, i32, i32) {
    %c0_i32 = arith.constant 0 : i32
    %c0_i32_0 = arith.constant 0 : i32
    return %arg0, %c0_i32, %arg1 : i32, i32, i32
  }
  func.func @transform_1(%arg0: i32, %arg1: i32) -> (i32, i32, i32, i32) {
    %c0_i32 = arith.constant 0 : i32
    %c0_i32_0 = arith.constant 0 : i32
    %c0_i32_1 = arith.constant 0 : i32
    return %arg0, %arg1, %c0_i32, %c0_i32_0 : i32, i32, i32, i32
  }
}

</mosaic_0001>

<bundles_post_ra>
// kernel: tpu_custom_call.1
= control target key start
LH: loop header
LB: loop body
LE: loop exit
PB: predicated region body
PF: predicated region fallthrough
CT: control target
= control target key end

     0   :  { %6 = vsyncpa [#allocation3], 0  ;;  %s679_s0 = inlined_call_operand.hbm [shape: f32[2,4,256], index: 0, kind: input, shape index: {}]   ;;  %s680_s1 = inlined_call_operand.hbm [shape: f32[2,1,1,128], index: 1, kind: output, shape index: {}]  }
   0x1   :  { %8 = vsyncpa [#allocation3 + $0x1], 0 }
   0x2   :  { %9 = vsyncpa [#allocation4], 0 }
   0x3   :  { %11 = vsyncpa [#allocation4 + $0x1], 0  ;;  %s502_s6 = smov 0   ;;  %s504_s7 = smov 0  }
   0x4   :  { %s506_s8 = smov 0   ;;  %s508_s9 = smov 0  }
   0x5   :  { %s510_s10 = smov 0   ;;  %s512_s11 = smov 0  }
   0x6 LB: > { %s294_s12 = sadd.s32 4294967295, %s488_s11   ;;  %s295_s13 = sadd.s32 4294967294, %s488_s11   ;;  %s488_s11 = sphi %s512_s11, %s17_s11   ;;  %s484_s10 = sphi %s510_s10, %s696_s10   ;;  %s480_s9 = sphi %s508_s9, %s695_s9   ;;  %s476_s8 = sphi %s506_s8, %s694_s8   ;;  %s472_s7 = sphi %s504_s7, %s693_s7   ;;  %s468_s6 = sphi %s502_s6, %s692_s6  }
   0x7   : > { %s29_s14 = sadd.s32 1, %s484_s10  ;;  %s38_s15 = sadd.s32 1, %s476_s8 }
   0x8   : > { %p31_p0 = scmp.ge.s32.totalorder %s29_s14, 2  ;;  %p45_p1 = scmp.ne.s32.totalorder %s476_s8, %s472_s7 }
   0x9   : > { %p46_p2 = scmp.eq.s32.totalorder %s488_s11, 0  ;;  %p51_p3 = scmp.ne.s32.totalorder %s472_s7, %s468_s6 }
   0xa   : > { %s698_s14 = smov (%p31_p0, %s29_s14), 0  ;;  %p52_p5 = scmp.eq.s32.totalorder %s294_s12, 0 }
   0xb   : > { %p543_p4 = por %p46_p2, %p45_p1  ;;  %s33_s17 = ssub.s32 %s484_s10, %s698_s14 }
   0xc   : > { %p77_p6 = scmp.eq.s32.totalorder %s294_s12, 1  ;;  %p36_p7 = scmp.eq.s32.totalorder %s33_s17, 0 }
   0xd   : > { %p549_p8 = por %p52_p5, %p51_p3  ;;  %p83_p10 = scmp.eq.s32.totalorder %s295_s13, 1 }
   0xe   : > { %p553_p9 = por %p77_p6, %p45_p1  ;;  %p319_p13 = scmp.lt.s32.totalorder %s488_s11, 2 }
   0xf   : > { %s558_s20 = scalar_select %p36_p7, %s476_s8, %s38_s15  }
  0x10   : > { %s684_s19 = scalar_select %p553_p9, 1, 0 }
  0x11   : > { %p560_p11 = por %p83_p10, %p51_p3  ;;  %s103_s22 = sand.u32 1, %s476_s8  }
  0x12   : > { %s298_s23 = sshll.u32 %s103_s22, 3  ;;  %s306_s24 = sshll.u32 %s484_s10, 7 }
  0x13   : > { %s685_s21 = scalar_select %p560_p11, 1, 0 }
  0x14   : > { %s571_s27 = scalar_lea.hbm %s679_s0, %s306_s24  ;;  %s107_s28 = scalar_lea.vmem [#allocation2], %s298_s23 }
  0x15   : > { %s117_s29 = sshll.u32 %s107_s28, 4  ;;  %p577_p0 = pnand %p319_p13, %p543_p4  ;;  %s573_s29 = int_to_ptr.vmem [resolvable:$true] %s117_s29 }
  0x16   : > { %s104_s2 = scalar_lea.sflag [#allocation3], %s103_s22  ;;  %s376_s3 = scalar_lea.hbm %s571_s27, 128 }
  0x17   : > { %p377_p3 = scmp.ne.s32.totalorder %s571_s27, %s376_s3  ;;  %p378_p5 = pneg %p577_p0 }
  0x18   : > { %s381_s12 = scalar_lea.hbm %s679_s0, 256  ;;  %p382_p4 = scmp.lt.u32.totalorder %s571_s27, %s679_s0 }
  0x19   : > { %p379_p6 = pnand %p378_p5, %p377_p3  ;;  %p383_p10 = scmp.lt.u32.totalorder %s381_s12, %s376_s3 }
  0x1a   : > { %p385_p12 = scmp.lt.u32.totalorder %s376_s3, %s571_s27 }
  0x1b   : > { %p380_p7 = pneg %p379_p6  ;;  %p384_p13 = por %p383_p10, %p382_p4 }
  0x1d   : > { %p386_p1 = por %p385_p12, %p384_p13 }
  0x1f   : > { %p387_p2 = pnand %p386_p1, %p380_p7 }
  0x21   : > { %390 = shalt.err (!%p387_p2)
}
  0x22   : > { %s391_s16 = scalar_lea.vmem %s573_s29, 128  ;;  %s490_s17 = smov [#allocation2]  }
  0x23   : > { %p392_p3 = scmp.ne.s32.totalorder %s573_s29, %s391_s16  ;;  %s396_s22 = sshll.u32 %s490_s17, 4  ;;  %s397_s22 = int_to_ptr.vmem [resolvable:$false] %s396_s22 }
  0x24   : > { %s398_s23 = scalar_lea.vmem %s397_s22, 256  ;;  %p399_p9 = scmp.lt.s32.totalorder %s573_s29, %s397_s22 }
  0x25   : > { %p394_p6 = pnand %p392_p3, %p378_p5  ;;  %p400_p4 = scmp.lt.s32.totalorder %s398_s23, %s391_s16 }
  0x27   : > { %p395_p11 = pneg %p394_p6  ;;  %p401_p10 = por %p400_p4, %p399_p9 }
  0x29   : > { %p402_p12 = pnand %p401_p10, %p395_p11 }
  0x2b   : > { %405 = shalt.err (!%p402_p12)
}
  0x2c   : > { %314 = dma.hbm_to_vmem [thread:$0]  (!%p577_p0), %s571_s27, 128, %s573_s29, %s104_s2  }
  0x2d   : > { %p687_p1 = scmp.lt.s32.totalorder %s488_s11, 3  ;;  %p688_p2 = scmp.ge.s32.totalorder %s488_s11, 1 }
  0x2f   : > { %p123_p5 = pnand %p688_p2, %p687_p1 }
  0x30   : > { %s613_s24 = sand.u32 (!%p123_p5), 1, %s472_s7  }
  0x31   : > { %126 = sbr.rel (%p123_p5) target bundleno = 134 (0x86), region = 24  ;;  %s302_s25 = sshll.u32 (!%p123_p5), %s613_s24, 3 }
  0x32   : > { %s129_s26 = scalar_lea.sflag (!%p123_p5), [#allocation3], %s613_s24  ;;  %s132_s28 = scalar_lea.vmem (!%p123_p5), [#allocation2], %s302_s25 }
  0x38   : > { %459 = dma.done.wait (%p549_p8), %s129_s26, 128  }
  0x39   : > { %461 = vsyncadd (%p549_p8), %s129_s26, 4294967168  ;;  %vm155_vm0 = vcmask 1043456   ;;  %v151_v0 = vld [vmem:[%s132_s28] sm:$0xff]  ;;  %s149_s18 = scalar_lea.vmem [#allocation5], %s613_s24  ;;  %s303_s29 = sshll.u32 %s480_s9, 4 }
  0x3a   : > { %v153_v1 = vcombine.high %v151_v0, %v151_v0  ;;  %v156_v2 = vsel %vm155_vm0, %v151_v0, -inf  ;;  %s216_s27 = sshll.u32 %s149_s18, 4  ;;  %s632_s3 = scalar_lea.hbm %s680_s1, %s303_s29  ;;  %s627_s27 = int_to_ptr.vmem [resolvable:$true] %s216_s27 }
  0x3b   : > { %v157_v3 = vrot.slane %v156_v2, 4  ;;  %s203_s4 = scalar_lea.sflag [#allocation4], %s613_s24  ;;  %s406_s5 = scalar_lea.vmem %s627_s27, 16 }
  0x3c   : > { %v163_v4 = vsel %vm155_vm0, %v153_v1, -inf  ;;  %p407_p8 = scmp.ne.s32.totalorder %s627_s27, %s406_s5  ;;  %p689_p9 = scmp.ne.s32.totalorder %s684_s19, 0 }
  0x3d   : > { %v158_v5 = vmax.f32 %v156_v2, %v157_v3  ;;  %v164_v6 = vrot.slane %v163_v4, 4  ;;  %s491_s9 = smov [#allocation5]  }
  0x3e   : > { %p408_p11 = pnand %p407_p8, %p689_p9  ;;  %s410_s12 = sshll.u32 %s491_s9, 4  ;;  %s411_s12 = int_to_ptr.vmem [resolvable:$false] %s410_s12 }
  0x3f   : > { %v159_v7 = vrot.slane %v158_v5, 2  ;;  %v165_v8 = vmax.f32 %v163_v4, %v164_v6  ;;  %s412_s13 = scalar_lea.vmem %s411_s12, 32  ;;  %p413_p7 = scmp.lt.s32.totalorder %s627_s27, %s411_s12 }
  0x40   : > { %p409_p0 = pneg %p408_p11  ;;  %p414_p13 = scmp.lt.s32.totalorder %s412_s13, %s406_s5 }
  0x41   : > { %v160_v9 = vmax.f32 %v158_v5, %v159_v7  ;;  %v166_v10 = vrot.slane %v165_v8, 2 }
  0x42   : > { %p415_p3 = por %p414_p13, %p413_p7 }
  0x43   : > { %v161_v11 = vrot.slane %v160_v9, 1  ;;  %v167_v12 = vmax.f32 %v165_v8, %v166_v10 }
  0x44   : > { %p416_p6 = pnand %p415_p3, %p409_p0 }
  0x45   : > { %v162_v13 = vmax.f32 %v160_v9, %v161_v11  ;;  %v168_v14 = vrot.slane %v167_v12, 1 }
  0x47   : > { %v169_v15 = vmax.f32 %v167_v12, %v168_v14 }
  0x49   : > { %v172_v16 = vcombine.low %v162_v13, %v169_v15 }
  0x4b   : > { %v174_v17 = vsub.f32 %v151_v0, %v172_v16 }
  0x4d   : > { %v175_v18 = vmul.f32 1.442695, %v174_v17 }
  0x4f   : > { %370 = vpow2.f32 %v175_v18 }
  0x59   : > { %v371_v19 = vpop.eup %370 }
  0x5a   : > { %v178_v20 = vcombine.high %v371_v19, %v371_v19  ;;  %v180_v21 = vsel %vm155_vm0, %v371_v19, 0.0 }
  0x5b   : > { %v181_v22 = vrot.slane %v180_v21, 4 }
  0x5c   : > { %v187_v23 = vsel %vm155_vm0, %v178_v20, 0.0 }
  0x5d   : > { %v182_v24 = vadd.f32 %v181_v22, %v180_v21  ;;  %v188_v25 = vrot.slane %v187_v23, 4 }
  0x5f   : > { %v183_v26 = vrot.slane %v182_v24, 2  ;;  %v189_v27 = vadd.f32 %v188_v25, %v187_v23 }
  0x61   : > { %v184_v28 = vadd.f32 %v183_v26, %v182_v24  ;;  %v190_v29 = vrot.slane %v189_v27, 2 }
  0x63   : > { %v185_v30 = vrot.slane %v184_v28, 1  ;;  %v191_v31 = vadd.f32 %v190_v29, %v189_v27 }
  0x65   : > { %v186_v32 = vadd.f32 %v185_v30, %v184_v28  ;;  %v192_v33 = vrot.slane %v191_v31, 1 }
  0x67   : > { %v193_v34 = vadd.f32 %v192_v33, %v191_v31  ;;  %372 = vrcp.f32 %v186_v32 }
  0x69   : > { %374 = vrcp.f32 %v193_v34 }
  0x71   : > { %v373_v35 = vpop.eup %372 }
  0x72   : > { %v198_v36 = vsub.f32 1.0, %v373_v35 }
  0x73   : > { %v375_v37 = vpop.eup %374 }
  0x74   : > { %v199_v38 = vsub.f32 1.0, %v375_v37 }
  0x76   : > { %v200_v39 = vadd.f32 %v199_v38, %v198_v36 }
  0x78   : > { %201 = vst [vmem:[%s149_s18] sm:$0x1] %v200_v39 }
  0x79   : > { %419 = shalt.err (!%p416_p6)
}
  0x7a   : > { %s420_s15 = scalar_lea.hbm %s632_s3, 16  ;;  %s424_s22 = scalar_lea.hbm %s680_s1, 32 }
  0x7b   : > { %p421_p4 = scmp.ne.s32.totalorder %s632_s3, %s420_s15  ;;  %p425_p1 = scmp.lt.u32.totalorder %s632_s3, %s680_s1 }
  0x7c   : > { %p426_p2 = scmp.lt.u32.totalorder %s424_s22, %s420_s15  ;;  %p428_p8 = scmp.lt.u32.totalorder %s420_s15, %s632_s3 }
  0x7d   : > { %p422_p10 = pnand %p421_p4, %p689_p9 }
  0x7e   : > { %p427_p5 = por %p426_p2, %p425_p1 }
  0x7f   : > { %p423_p12 = pneg %p422_p10 }
  0x80   : > { %p429_p11 = por %p428_p8, %p427_p5 }
  0x82   : > { %p430_p0 = pnand %p429_p11, %p423_p12 }
  0x84   : > { %433 = shalt.err (!%p430_p0)
}
  0x85   : > { %309 = dma.vmem_to_hbm [thread:$0]  (%p689_p9), %s627_s27, 16, %s632_s3, %s203_s4  }
  0x86 PF: > { %s228_s25 = sand.u32 1, %s468_s6   ;;  %p690_p7 = scmp.ne.s32.totalorder %s685_s21, 0 }
  0x87   : > { %p691_p13 = scmp.ge.s32.totalorder %s488_s11, 2  ;;  %s229_s26 = scalar_lea.sflag [#allocation4], %s228_s25 }
  0x89   : > { %p316_p3 = pnand %p691_p13, %p690_p7 }
  0x8b   : > { %463 = dma.done.wait (!%p316_p3), %s229_s26, 16  }
  0x8c   : > { %465 = vsyncadd (!%p316_p3), %s229_s26, 4294967280  ;;  %s17_s11 = sadd.s32 1, %s488_s11   ;;  %s692_s6 = smov %s472_s7 }
  0x8d   : > { %p14_p6 = scmp.ge.s32.totalorder %s17_s11, 4   ;;  %s693_s7 = smov %s476_s8 }
  0x8e   : > { %s694_s8 = smov %s558_s20  ;;  %s695_s9 = smov %s484_s10 }
  0x8f   : > { %s696_s10 = smov %s698_s14  ;;  %16 = sbr.rel (!%p14_p6) target bundleno = 6 (0x6), region = 69 }
  0x96   :  { %233 = vsyncpa [#allocation3], 1 }
  0x97   :  { %235 = vsyncpa [#allocation3 + $0x1], 1 }
  0x98   :  { %236 = vsyncpa [#allocation4], 1 }
  0x99   :  { %238 = vsyncpa [#allocation4 + $0x1], 1 }

</bundles_post_ra>
